<compile_context>
chip_gen: v6e
topology: v6e:2x2x1
jax: 0.10.0
libtpu: 0.0.40
codegen_flags: <defaults>
</compile_context>

<pallas_src>
import functools

import jax
import jax.numpy as jnp
from jax import lax
from jax.experimental import pallas as pl
from jax.experimental.pallas import tpu as pltpu

_LANE = 128
_SUBLANE = 8
_VMEM_LIMIT_BYTES = 32 * 1024 * 1024   # <= default scoped VMEM everywhere incl. v7x
_VMEM_TILE_BUDGET = 16 * 1024 * 1024   # in/out double-buffers + live f32 X, p_m, temps
_MAX_F32_BISECT_ITERS = 30             # dm underflows f32 resolution of tau beyond this
_TRANSPOSE_MAX_D = 512                 # small-D: use features-on-sublanes layout


def _round_up(x: int, m: int) -> int:
    return ((x + m - 1) // m) * m


def _make_p_fn(alpha: float):
    """_p(Z) = clamp(Z, min=0) ** (1/(alpha-1)), specialized at trace time."""
    inv_am1 = 1.0 / (alpha - 1.0)
    k = round(inv_am1)
    if abs(inv_am1 - k) < 1e-12 and 1 <= k <= 4:
        k = int(k)

        def _p(Z):
            z = jnp.maximum(Z, 0.0)
            out = z
            for _ in range(k - 1):      # alpha=1.5 -> a single VALU multiply (z*z)
                out = out * z
            return out
    else:

        def _p(Z):                       # generic fallback (EUP pow)
            return jnp.power(jnp.maximum(Z, 0.0), inv_am1)

    return _p


def _tsallis_kernel(x_ref, o_ref, *, alpha: float, n_iter: int, d: int, feat_axis: int):
    _p = _make_p_fn(alpha)

    # Load the tile; compute in f32 (cast is cheap on the VPU).
    X = x_ref[...].astype(jnp.float32) * (alpha - 1.0)

    max_val = jnp.max(X, axis=feat_axis, keepdims=True)
    tau_lo = max_val - 1.0                                # _gp(1, alpha) == 1
    tau_hi = max_val - (1.0 / d) ** (alpha - 1.0)         # _gp(1/d, alpha)
    dm = tau_hi - tau_lo

    # f(tau_lo) >= 0 always (the max element alone contributes p(1) = 1), so the
    # PyTorch sign test (f_m * f_lo >= 0) reduces to (f_m >= 0).
    def body(_, carry):
        tau_lo, dm, _p_prev, _f_prev = carry
        dm = dm * 0.5
        tau_m = tau_lo + dm
        p_m = _p(X - tau_m)
        f_m = jnp.sum(p_m, axis=feat_axis, keepdims=True) - 1.0
        tau_lo = jnp.where(f_m >= 0.0, tau_m, tau_lo)
        return tau_lo, dm, p_m, f_m

    init = (tau_lo, dm, jnp.zeros_like(X), jnp.zeros_like(tau_lo))
    _, _, p_m, f_m = lax.fori_loop(0, n_iter, body, init)

    # sum(p_m) at the last step is ~1, so f_m + 1 reconstructs it exactly
    # (Sterbenz) — no post-loop full-tile pass / reduction needed.
    p_sum = f_m + 1.0
    inv = pl.reciprocal(p_sum, approx=True)
    inv = inv * (2.0 - p_sum * inv)                       # one Newton step
    o_ref[...] = (p_m * inv).astype(o_ref.dtype)


def _pick_tile(n_items: int, per_item_bytes: int, unit: int, cap: int, min_split: int) -> int:
    """Pick the tile extent along the row axis (rows or lane-columns)."""
    fit = (_VMEM_TILE_BUDGET // max(per_item_bytes, 1)) // unit * unit
    if fit < unit:
        # TODO(synk): feature-axis chunking (emit_pipeline over D with a
        # partial-sum carry) for vocabulary-sized feature dims.
        raise ValueError(
            "feature dimension too large for a single VMEM tile; "
            "feature-axis chunking is not implemented")
    bm = min(fit, cap, _round_up(n_items, unit))
    # v7x megacore balance: aim for >= 8 grid steps, but only when there is
    # enough work that the smaller tiles stay compute-dominated. This is a
    # no-op for small inputs, so 1-TC v5e/v6e keep a single large tile.
    if n_items >= 8 * min_split:
        per_step = _round_up(-(-n_items // 8), unit)
        bm = min(bm, max(min_split, per_step))
    return max(bm, unit)


def tsallis_bisect(X, alpha: float = 1.5, n_iter: int = 50, block_rows=None, transpose=None):
    assert X.ndim == 2, "TsallisBisect expects a 2-D input"
    assert alpha > 1.0, "bisection path requires alpha > 1 (alpha == 1 is softmax)"
    assert n_iter >= 1
    N, D = X.shape
    out_dtype = X.dtype

    if transpose is None:
        transpose = D <= _TRANSPOSE_MAX_D

    # dm starts <= 1 and halves every step: past ~30 steps tau_m is unchanged at
    # f32 resolution, so extra iterations are pure wasted VALU/XLU work.
    n_eff = min(int(n_iter), _MAX_F32_BISECT_ITERS)

    in_sz = X.dtype.itemsize
    out_sz = jnp.dtype(out_dtype).itemsize

    if transpose:
        # Features on sublanes, rows lane-dense: the per-iteration feature
        # reduction becomes VALU vreg-adds + short sublane reduce.
        D_pad = _round_up(D, _SUBLANE)
        unit, cap, min_split = _LANE, 4 * _LANE, _LANE
    else:
        # Lane-dense feature axis (unmasked vector stores).
        D_pad = _round_up(D, _LANE)
        unit, cap, min_split = _SUBLANE, 256, 8 * _SUBLANE

    # Per-row footprint: double-buffered in/out tiles + live f32 X, p_m, temp.
    per_item = D_pad * (2 * in_sz + 2 * out_sz + 3 * 4)
    if block_rows is None:
        bm = _pick_tile(N, per_item, unit, cap, min_split)
    else:
        bm = int(block_rows)
        assert bm % unit == 0, f"block_rows must be a multiple of {unit} for this layout"
    N_pad = _round_up(N, bm)

    Xp = X
    if D_pad != D:
        # Padded features get a huge negative logit so they never enter the support.
        Xp = jnp.pad(Xp, ((0, 0), (0, D_pad - D)), constant_values=-1e30)
    if N_pad != N:
        # Padded rows are sliced off afterwards; zeros keep the kernel NaN-free.
        Xp = jnp.pad(Xp, ((0, N_pad - N), (0, 0)))

    kernel = functools.partial(
        _tsallis_kernel, alpha=float(alpha), n_iter=n_eff, d=int(D),
        feat_axis=0 if transpose else 1,
    )

    if transpose:
        Xk = Xp.T                       # (D_pad, N_pad)
        block = (D_pad, bm)
        index_map = lambda i: (0, i)
        out_shape = jax.ShapeDtypeStruct((D_pad, N_pad), out_dtype)
    else:
        Xk = Xp                         # (N_pad, D_pad)
        block = (bm, D_pad)
        index_map = lambda i: (i, 0)
        out_shape = jax.ShapeDtypeStruct((N_pad, D_pad), out_dtype)

    out = pl.pallas_call(
        kernel,
        out_shape=out_shape,
        grid_spec=pltpu.PrefetchScalarGridSpec(
            num_scalar_prefetch=0,
            grid=(N_pad // bm,),
            in_specs=[pl.BlockSpec(block, index_map)],
            out_specs=pl.BlockSpec(block, index_map),
        ),
        compiler_params=pltpu.CompilerParams(
            dimension_semantics=("parallel",),
            vmem_limit_bytes=_VMEM_LIMIT_BYTES,
        ),
    )(Xk)

    if transpose:
        out = out[:D, :N].T
    else:
        out = out[:N, :D]
    return out


def _reference(X, alpha=1.5, n_iter=50):
    # Pure-JAX mirror of the PyTorch tsallis_bisect + TsallisBisect.forward
    # (keeps f_lo and the product-sign mask, uses generic pow, exact division).
    X = X.astype(jnp.float32)
    d = X.shape[1]
    X = X * (alpha - 1.0)
    _p = lambda Z: jnp.power(jnp.maximum(Z, 0.0), 1.0 / (alpha - 1.0))
    max_val = jnp.max(X, axis=1, keepdims=True)
    tau_lo = max_val - 1.0 ** (alpha - 1.0)
    tau_hi = max_val - (1.0 / d) ** (alpha - 1.0)
    f_lo = jnp.sum(_p(X - tau_lo), axis=1, keepdims=True) - 1.0
    dm = tau_hi - tau_lo
    p_m = _p(X - tau_hi)
    for _ in range(n_iter):
        dm = dm * 0.5
        tau_m = tau_lo + dm
        p_m = _p(X - tau_m)
        f_m = jnp.sum(p_m, axis=1, keepdims=True) - 1.0
        tau_lo = jnp.where((f_m * f_lo) >= 0.0, tau_m, tau_lo)
    return p_m / jnp.sum(p_m, axis=1, keepdims=True)


if __name__ == "__main__":
    key = jax.random.PRNGKey(0)
    k1, k2 = jax.random.split(key)

    # Small-D path (transposed layout: features on sublanes, rows lane-dense).
    X1 = jax.random.normal(k1, (16, 128), dtype=jnp.float32) * 2.0
    out1 = jax.block_until_ready(tsallis_bisect(X1, alpha=1.5, n_iter=50))
    ref1 = _reference(X1, alpha=1.5, n_iter=50)
    assert out1.shape == X1.shape
    err1 = float(jnp.max(jnp.abs(out1 - ref1)))
    assert err1 < 1e-4, f"max_err={err1}"
    sum1 = float(jnp.max(jnp.abs(jnp.sum(out1, axis=1) - 1.0)))
    assert sum1 < 1e-5, f"sum_err={sum1}"

    # Ragged large-D path (row-major layout, lane + row padding).
    X2 = jax.random.normal(k2, (13, 600), dtype=jnp.float32) * 3.0
    out2 = jax.block_until_ready(tsallis_bisect(X2, alpha=1.5, n_iter=50))
    ref2 = _reference(X2, alpha=1.5, n_iter=50)
    assert out2.shape == X2.shape
    err2 = float(jnp.max(jnp.abs(out2 - ref2)))
    assert err2 < 1e-4, f"max_err={err2}"
    sum2 = float(jnp.max(jnp.abs(jnp.sum(out2, axis=1) - 1.0)))
    assert sum2 < 5e-5, f"sum_err={sum2}"

    print("KERNEL_OK")
</pallas_src>

<mosaic_0001>
module attributes {stable_mosaic.version = 11 : i64} {
  func.func @_tsallis_kernel(%arg0: i32, %arg1: memref<128x128xf32, #tpu.memory_space<vmem>>, %arg2: memref<128x128xf32, #tpu.memory_space<vmem>>) attributes {dimension_semantics = [#tpu.dimension_semantics<parallel>], iteration_bounds = array<i64: 1>, scalar_prefetch = 0 : i64, scratch_operands = 0 : i64, tpu.core_type = #tpu.core_type<tc>, window_params = [{transform_indices = @transform_0, window_bounds = array<i64: 128, 128>}, {transform_indices = @transform_1, window_bounds = array<i64: 128, 128>}]} {
    %c0 = arith.constant 0 : index
    %c0_0 = arith.constant 0 : index
    %0 = vector.load %arg1[%c0, %c0_0] : memref<128x128xf32, #tpu.memory_space<vmem>>, vector<128x128xf32>
    %cst = arith.constant 5.000000e-01 : f32
    %1 = vector.broadcast %cst : f32 to vector<128x128xf32>
    %2 = arith.mulf %0, %1 : vector<128x128xf32>
    %cst_1 = arith.constant dense<0xFF800000> : vector<128xf32>
    %3 = vector.multi_reduction <maximumf>, %2, %cst_1 [0] : vector<128x128xf32> to vector<128xf32>
    %4 = vector.shape_cast %3 : vector<128xf32> to vector<1x128xf32>
    %cst_2 = arith.constant 1.000000e+00 : f32
    %5 = vector.broadcast %cst_2 : f32 to vector<1x128xf32>
    %6 = arith.subf %4, %5 : vector<1x128xf32>
    %cst_3 = arith.constant 0.0883883461 : f32
    %7 = vector.broadcast %cst_3 : f32 to vector<1x128xf32>
    %8 = arith.subf %4, %7 : vector<1x128xf32>
    %9 = arith.subf %8, %6 : vector<1x128xf32>
    %cst_4 = arith.constant 0.000000e+00 : f32
    %10 = vector.broadcast %cst_4 : f32 to vector<128x128xf32>
    %cst_5 = arith.constant 0.000000e+00 : f32
    %11 = vector.broadcast %cst_5 : f32 to vector<1x128xf32>
    %c0_i32 = arith.constant 0 : i32
    %c30_i32 = arith.constant 30 : i32
    %12 = arith.addi %c0_i32, %c30_i32 : i32
    %c1_i32 = arith.constant 1 : i32
    %13:4 = scf.for %arg3 = %c0_i32 to %12 step %c1_i32 iter_args(%arg4 = %6, %arg5 = %9, %arg6 = %10, %arg7 = %11) -> (vector<1x128xf32>, vector<1x128xf32>, vector<128x128xf32>, vector<1x128xf32>)  : i32 {
      %cst_10 = arith.constant 5.000000e-01 : f32
      %24 = vector.broadcast %cst_10 : f32 to vector<1x128xf32>
      %25 = arith.mulf %arg5, %24 : vector<1x128xf32>
      %26 = arith.addf %arg4, %25 : vector<1x128xf32>
      %27 = vector.broadcast %26 : vector<1x128xf32> to vector<128x128xf32>
      %28 = arith.subf %2, %27 : vector<128x128xf32>
      %cst_11 = arith.constant 0.000000e+00 : f32
      %29 = vector.broadcast %cst_11 : f32 to vector<128x128xf32>
      %30 = arith.maximumf %28, %29 : vector<128x128xf32>
      %31 = arith.mulf %30, %30 : vector<128x128xf32>
      %cst_12 = arith.constant dense<0.000000e+00> : vector<128xf32>
      %32 = vector.multi_reduction <add>, %31, %cst_12 [0] : vector<128x128xf32> to vector<128xf32>
      %33 = vector.shape_cast %32 : vector<128xf32> to vector<1x128xf32>
      %cst_13 = arith.constant 1.000000e+00 : f32
      %34 = vector.broadcast %cst_13 : f32 to vector<1x128xf32>
      %35 = arith.subf %33, %34 : vector<1x128xf32>
      %cst_14 = arith.constant 0.000000e+00 : f32
      %36 = vector.broadcast %cst_14 : f32 to vector<1x128xf32>
      %37 = arith.cmpf oge, %35, %36 : vector<1x128xf32>
      %38 = arith.select %37, %26, %arg4 : vector<1x128xi1>, vector<1x128xf32>
      scf.yield %38, %25, %31, %35 : vector<1x128xf32>, vector<1x128xf32>, vector<128x128xf32>, vector<1x128xf32>
    }
    %cst_6 = arith.constant 1.000000e+00 : f32
    %14 = vector.broadcast %cst_6 : f32 to vector<1x128xf32>
    %15 = arith.addf %13#3, %14 : vector<1x128xf32>
    %16 = tpu.reciprocal %15 {approx = true} : vector<1x128xf32> -> vector<1x128xf32>
    %17 = arith.mulf %15, %16 : vector<1x128xf32>
    %cst_7 = arith.constant 2.000000e+00 : f32
    %18 = vector.broadcast %cst_7 : f32 to vector<1x128xf32>
    %19 = arith.subf %18, %17 : vector<1x128xf32>
    %20 = arith.mulf %16, %19 : vector<1x128xf32>
    %21 = vector.broadcast %20 : vector<1x128xf32> to vector<128x128xf32>
    %22 = arith.mulf %13#2, %21 : vector<128x128xf32>
    %c0_8 = arith.constant 0 : index
    %c0_9 = arith.constant 0 : index
    %23 = vector.load %arg2[%c0_8, %c0_9] : memref<128x128xf32, #tpu.memory_space<vmem>>, vector<128x128xf32>
    tpu.vector_store %arg2[%c0_8, %c0_9], %22 {strides = array<i32>} : memref<128x128xf32, #tpu.memory_space<vmem>>, vector<128x128xf32>,
    return
  }
  func.func @transform_0(%arg0: i32) -> (i32, i32) {
    %c0_i32 = arith.constant 0 : i32
    %c0_i32_0 = arith.constant 0 : i32
    return %c0_i32, %arg0 : i32, i32
  }
  func.func @transform_1(%arg0: i32) -> (i32, i32) {
    %c0_i32 = arith.constant 0 : i32
    %c0_i32_0 = arith.constant 0 : i32
    return %c0_i32, %arg0 : i32, i32
  }
}

</mosaic_0001>

<bundles_post_ra>
// kernel: tpu_custom_call.1
= control target key start
LH: loop header
LB: loop body
LE: loop exit
PB: predicated region body
PF: predicated region fallthrough
CT: control target
= control target key end

     0   :  { %6 = vsyncpa [#allocation3], 0  ;;  %s558_s0 = inlined_call_operand.hbm [shape: f32[128,128], index: 0, kind: input, shape index: {}]   ;;  %s559_s1 = inlined_call_operand.hbm [shape: f32[128,128], index: 1, kind: output, shape index: {}]  }
   0x1   :  { %7 = vsyncpa [#allocation4], 0  ;;  %s395_s6 = smov [#allocation2]  }
   0x2   :  { %s13_s7 = sshll.u32 %s395_s6, 4  ;;  %s14_s7 = int_to_ptr.vmem [resolvable:$true] %s13_s7 }
   0x3   :  { %s335_s8 = scalar_lea.vmem %s14_s7, 2048  ;;  %p340_p1 = scmp.lt.s32.totalorder %s14_s7, %s14_s7 }
   0x4   :  { %p336_p0 = scmp.ne.s32.totalorder %s14_s7, %s335_s8  ;;  %p341_p2 = scmp.lt.s32.totalorder %s335_s8, %s335_s8 }
   0x6   :  { %p342_p3 = por %p341_p2, %p340_p1 }
   0x8   :  { %p343_p4 = pnand %p342_p3, %p336_p0 }
   0xa   :  { %346 = shalt.err (!%p343_p4)
}
   0xb   :  { %s396_s9 = smov 128   ;;  %s397_s10 = smov 8  }
   0xc   :  { %19 = dma.hbm_to_vmem [thread:$0]  %s558_s0, 2048, %s14_s7, [#allocation3], %s396_s9, %s396_s9, %s397_s10  }
   0xd   :  { %379 = dma.done.wait [#allocation3], 2048  }
   0xe   :  { %380 = vsyncadd [#allocation3], 4294965248  ;;  %v23_v0 = vld [vmem:[#allocation2] sm:$0xff]  ;;  %v24_v1 = vld [vmem:[#allocation2 + $0x8] sm:$0xff]  ;;  %s467_s0 = smov 0  }
   0xf   :  { %v25_v2 = vld [vmem:[#allocation2 + $0x10] sm:$0xff]  ;;  %v26_v3 = vld [vmem:[#allocation2 + $0x18] sm:$0xff]  ;;  %v27_v4 = vld [vmem:[#allocation2 + $0x20] sm:$0xff]  ;;  %v415_v6 = vmul.f32 0.5, %v23_v0  ;;  %v417_v7 = vmul.f32 0.5, %v24_v1 }
  0x10   :  { %v28_v5 = vld [vmem:[#allocation2 + $0x28] sm:$0xff]  ;;  %v419_v8 = vmul.f32 0.5, %v25_v2  ;;  %v29_v9 = vld [vmem:[#allocation2 + $0x30] sm:$0xff]  ;;  %v30_v10 = vld [vmem:[#allocation2 + $0x38] sm:$0xff]  ;;  %v421_v12 = vmul.f32 0.5, %v26_v3  ;;  %v423_v13 = vmul.f32 0.5, %v27_v4 }
  0x11   :  { %v31_v11 = vld [vmem:[#allocation2 + $0x40] sm:$0xff]  ;;  %v425_v14 = vmul.f32 0.5, %v28_v5  ;;  %v32_v15 = vld [vmem:[#allocation2 + $0x48] sm:$0xff]  ;;  %v33_v16 = vld [vmem:[#allocation2 + $0x50] sm:$0xff]  ;;  %v427_v18 = vmul.f32 0.5, %v29_v9  ;;  %v429_v19 = vmul.f32 0.5, %v30_v10 }
  0x12   :  { %v34_v17 = vld [vmem:[#allocation2 + $0x58] sm:$0xff]  ;;  %v431_v20 = vmul.f32 0.5, %v31_v11  ;;  %v35_v21 = vld [vmem:[#allocation2 + $0x60] sm:$0xff]  ;;  %v36_v22 = vld [vmem:[#allocation2 + $0x68] sm:$0xff]  ;;  %v433_v24 = vmul.f32 0.5, %v32_v15  ;;  %v435_v25 = vmul.f32 0.5, %v33_v16  ;;  %v55_v27 = vmax.f32 %v415_v6, %v423_v13 }
  0x13   :  { %v37_v23 = vld [vmem:[#allocation2 + $0x70] sm:$0xff]  ;;  %v437_v26 = vmul.f32 0.5, %v34_v17  ;;  %v38_v28 = vld [vmem:[#allocation2 + $0x78] sm:$0xff]  ;;  %v441_v29 = vmul.f32 0.5, %v35_v21  ;;  %v443_v30 = vmul.f32 0.5, %v36_v22  ;;  %v56_v32 = vmax.f32 %v417_v7, %v425_v14 }
  0x14   :  { %v445_v31 = vmul.f32 0.5, %v37_v23  ;;  %v449_v33 = vmul.f32 0.5, %v38_v28  ;;  %v57_v34 = vmax.f32 %v419_v8, %v427_v18  ;;  %v58_v35 = vmax.f32 %v421_v12, %v429_v19 }
  0x15   :  { %v59_v36 = vmax.f32 %v55_v27, %v431_v20  ;;  %v60_v37 = vmax.f32 %v56_v32, %v433_v24 }
  0x16   :  { %v61_v38 = vmax.f32 %v57_v34, %v435_v25  ;;  %v62_v39 = vmax.f32 %v58_v35, %v437_v26 }
  0x17   :  { %v63_v40 = vmax.f32 %v59_v36, %v441_v29  ;;  %v64_v41 = vmax.f32 %v60_v37, %v443_v30 }
  0x18   :  { %v65_v42 = vmax.f32 %v61_v38, %v445_v31  ;;  %v66_v43 = vmax.f32 %v62_v39, %v449_v33 }
  0x19   :  { %v67_v44 = vmax.f32 %v63_v40, %v64_v41 }
  0x1a   :  { %v68_v45 = vmax.f32 %v65_v42, %v66_v43 }
  0x1c   :  { %v69_v46 = vmax.f32 %v67_v44, %v68_v45 }
  0x1e   :  { %v70_v47 = vrot.slane %v69_v46, 4 }
  0x20   :  { %v71_v48 = vmax.f32 %v69_v46, %v70_v47 }
  0x22   :  { %v72_v49 = vrot.slane %v71_v48, 2 }
  0x24   :  { %v73_v50 = vmax.f32 %v71_v48, %v72_v49 }
  0x26   :  { %v74_v51 = vrot.slane %v73_v50, 1 }
  0x28   :  { %v75_v52 = vmax.f32 %v73_v50, %v74_v51 }
  0x2a   :  { %v294_v53 = vadd.f32 -1.0, %v75_v52   ;;  %v295_v54 = vadd.f32 -0.088388346, %v75_v52 }
  0x2c   :  { %v78_v55 = vsub.f32 %v295_v54, %v294_v53  }
  0x2d LB: > { %v476_v55 = vmul.f32 0.5, %v385_v55   ;;  %s84_s0 = sadd.s32 1, %s393_s0   ;;  %s393_s0 = sphi %s467_s0, %s84_s0   ;;  %v389_v53 = vphi %v294_v53, %v177_v53   ;;  %v385_v55 = vphi %v78_v55, %v476_v55  }
  0x2e   : > { %p81_p5 = scmp.ge.s32.totalorder %s84_s0, 30  }
  0x2f   : > { %v480_v56 = vadd.f32 %v389_v53, %v476_v55  ;;  %s398_s13 = smov (%p81_p5), [#allocation5]  }
  0x30   :  { %s220_s14 = sshll.u32 (%p81_p5), %s398_s13, 4  ;;  %s221_s14 = int_to_ptr.vmem [resolvable:$true] %s220_s14 }
  0x31   : > { %v106_v57 = vsub.f32 %v415_v6, %v480_v56  ;;  %v107_v58 = vsub.f32 %v417_v7, %v480_v56  ;;  %v108_v59 = vsub.f32 %v419_v8, %v480_v56  ;;  %v109_v60 = vsub.f32 %v421_v12, %v480_v56  ;;  %s347_s15 = scalar_lea.vmem (%p81_p5), %s221_s14, 2048  ;;  %p352_p7 = scmp.lt.s32.totalorder (%p81_p5), %s221_s14, %s221_s14 }
  0x32   : > { %v110_v63 = vsub.f32 %v423_v13, %v480_v56  ;;  %v111_v1 = vsub.f32 %v425_v14, %v480_v56  ;;  %v112_v5 = vsub.f32 %v427_v18, %v480_v56  ;;  %v113_v11 = vsub.f32 %v429_v19, %v480_v56  ;;  %p348_p6 = scmp.ne.s32.totalorder (%p81_p5), %s221_s14, %s347_s15  ;;  %p353_p8 = scmp.lt.s32.totalorder (%p81_p5), %s347_s15, %s347_s15 }
  0x33   : > { %v122_v61 = vmax.f32 %v106_v57, 0.0  ;;  %v123_v62 = vmax.f32 %v107_v58, 0.0  ;;  %v124_v0 = vmax.f32 %v108_v59, 0.0  ;;  %v125_v2 = vmax.f32 %v109_v60, 0.0 }
  0x34   : > { %v126_v9 = vmax.f32 %v110_v63, 0.0  ;;  %v127_v15 = vmax.f32 %v111_v1, 0.0  ;;  %v114_v21 = vsub.f32 %v431_v20, %v480_v56  ;;  %v128_v22 = vmax.f32 %v112_v5, 0.0  ;;  %p354_p9 = por (%p81_p5), %p353_p8, %p352_p7 }
  0x35   : > { %v494_v3 = vmul.f32 %v122_v61, %v122_v61  ;;  %v496_v4 = vmul.f32 %v123_v62, %v123_v62  ;;  %v500_v10 = vmul.f32 %v124_v0, %v124_v0  ;;  %v504_v16 = vmul.f32 %v125_v2, %v125_v2 }
  0x36   : > { %v510_v23 = vmul.f32 %v126_v9, %v126_v9  ;;  %v115_v28 = vsub.f32 %v433_v24, %v480_v56  ;;  %v129_v32 = vmax.f32 %v113_v11, 0.0  ;;  %v515_v34 = vmul.f32 %v127_v15, %v127_v15  ;;  %p355_p10 = pnand (%p81_p5), %p354_p9, %p348_p6 }
  0x37   : > { %v154_v17 = vadd.f32 %v496_v4, %v494_v3  ;;  %v116_v36 = vsub.f32 %v435_v25, %v480_v56  ;;  %v130_v37 = vmax.f32 %v114_v21, 0.0  ;;  %v520_v38 = vmul.f32 %v128_v22, %v128_v22 }
  0x38   : > { %v117_v40 = vsub.f32 %v437_v26, %v480_v56  ;;  %v131_v41 = vmax.f32 %v115_v28, 0.0  ;;  %v145_v42 = vmul.f32 %v129_v32, %v129_v32  ;;  %v118_v44 = vsub.f32 %v441_v29, %v480_v56 }
  0x39   : > { %v155_v27 = vadd.f32 %v154_v17, %v500_v10  ;;  %v132_v45 = vmax.f32 %v116_v36, 0.0  ;;  %v146_v46 = vmul.f32 %v130_v37, %v130_v37  ;;  %v119_v48 = vsub.f32 %v443_v30, %v480_v56 }
  0x3a   : > { %v133_v49 = vmax.f32 %v117_v40, 0.0  ;;  %v147_v50 = vmul.f32 %v131_v41, %v131_v41  ;;  %v120_v52 = vsub.f32 %v445_v31, %v480_v56  ;;  %v134_v54 = vmax.f32 %v118_v44, 0.0 }
  0x3b   : > { %v156_v35 = vadd.f32 %v155_v27, %v504_v16  ;;  %v148_v57 = vmul.f32 %v132_v45, %v132_v45  ;;  %v121_v59 = vsub.f32 %v449_v33, %v480_v56  ;;  %v135_v60 = vmax.f32 %v119_v48, 0.0 }
  0x3c   : > { %v149_v61 = vmul.f32 %v133_v49, %v133_v49  ;;  %v136_v63 = vmax.f32 %v120_v52, 0.0  ;;  %v150_v0 = vmul.f32 %v134_v54, %v134_v54 }
  0x3d   : > { %v157_v39 = vadd.f32 %v156_v35, %v510_v23  ;;  %v137_v2 = vmax.f32 %v121_v59, 0.0  ;;  %v151_v5 = vmul.f32 %v135_v60, %v135_v60 }
  0x3e   : > { %v152_v11 = vmul.f32 %v136_v63, %v136_v63 }
  0x3f   : > { %v158_v43 = vadd.f32 %v157_v39, %v515_v34  ;;  %v153_v17 = vmul.f32 %v137_v2, %v137_v2 }
  0x41   : > { %v159_v47 = vadd.f32 %v158_v43, %v520_v38 }
  0x43   : > { %v160_v51 = vadd.f32 %v159_v47, %v145_v42 }
  0x45   : > { %v161_v58 = vadd.f32 %v160_v51, %v146_v46 }
  0x47   : > { %v162_v62 = vadd.f32 %v161_v58, %v147_v50 }
  0x49   : > { %v163_v1 = vadd.f32 %v162_v62, %v148_v57 }
  0x4b   : > { %v164_v9 = vadd.f32 %v163_v1, %v149_v61 }
  0x4d   : > { %v165_v15 = vadd.f32 %v164_v9, %v150_v0 }
  0x4f   : > { %v166_v21 = vadd.f32 %v165_v15, %v151_v5 }
  0x51   : > { %v167_v22 = vadd.f32 %v166_v21, %v152_v11 }
  0x53   : > { %v168_v27 = vadd.f32 %v167_v22, %v153_v17 }
  0x55   : > { %v169_v28 = vrot.slane %v168_v27, 4 }
  0x57   : > { %v170_v32 = vadd.f32 %v169_v28, %v168_v27 }
  0x59   : > { %v171_v35 = vrot.slane %v170_v32, 2 }
  0x5b   : > { %v172_v36 = vadd.f32 %v171_v35, %v170_v32 }
  0x5d   : > { %v173_v37 = vrot.slane %v172_v36, 1 }
  0x5f   : > { %v174_v39 = vadd.f32 %v173_v37, %v172_v36 }
  0x60   :  { %83 = sbr.rel (!%p81_p5) target bundleno = 45 (0x2d), region = 35 }
  0x61   : > { %v296_v40 = vadd.f32 -1.0, %v174_v39 }
  0x63   : > { %vm176_vm0 = vcmp.ge.f32.partialorder %v296_v40, 0.0  ;;  %v178_v41 = vadd.f32 (%p81_p5), 1.0, %v296_v40 }
  0x64   : > { %v177_v53 = vsel %vm176_vm0, %v480_v56, %v389_v53  }
  0x65   :  { %325 = vrcp.f32 %v178_v41 }
  0x72   :  { %v326_v43 = vpop.eup %325 }
  0x73   :  { %v180_v44 = vmul.f32 %v326_v43, %v178_v41 }
  0x75   :  { %v181_v45 = vsub.f32 2.0, %v180_v44 }
  0x77   :  { %v182_v47 = vmul.f32 %v326_v43, %v181_v45 }
  0x79   :  { %v183_v48 = vmul.f32 %v182_v47, %v494_v3  ;;  %v184_v56 = vmul.f32 %v182_v47, %v496_v4  ;;  %v185_v49 = vmul.f32 %v182_v47, %v500_v10  ;;  %v186_v51 = vmul.f32 %v182_v47, %v504_v16 }
  0x7a   :  { %v187_v53 = vmul.f32 %v182_v47, %v510_v23  ;;  %v188_v52 = vmul.f32 %v182_v47, %v515_v34  ;;  %v189_v6 = vmul.f32 %v182_v47, %v520_v38  ;;  %v190_v7 = vmul.f32 %v182_v47, %v145_v42 }
  0x7b   :  { %199 = vst [vmem:[#allocation5] sm:$0xff] %v183_v48  ;;  %200 = vst [vmem:[#allocation5 + $0x8] sm:$0xff] %v184_v56  ;;  %v191_v8 = vmul.f32 %v182_v47, %v146_v46  ;;  %v192_v12 = vmul.f32 %v182_v47, %v147_v50  ;;  %v193_v13 = vmul.f32 %v182_v47, %v148_v57 }
  0x7c   :  { %201 = vst [vmem:[#allocation5 + $0x10] sm:$0xff] %v185_v49  ;;  %202 = vst [vmem:[#allocation5 + $0x18] sm:$0xff] %v186_v51  ;;  %v194_v14 = vmul.f32 %v182_v47, %v149_v61  ;;  %v195_v18 = vmul.f32 %v182_v47, %v150_v0  ;;  %v196_v19 = vmul.f32 %v182_v47, %v151_v5 }
  0x7d   :  { %203 = vst [vmem:[#allocation5 + $0x20] sm:$0xff] %v187_v53  ;;  %204 = vst [vmem:[#allocation5 + $0x28] sm:$0xff] %v188_v52  ;;  %v197_v20 = vmul.f32 %v182_v47, %v152_v11  ;;  %v198_v24 = vmul.f32 %v182_v47, %v153_v17 }
  0x7e   :  { %205 = vst [vmem:[#allocation5 + $0x30] sm:$0xff] %v189_v6  ;;  %206 = vst [vmem:[#allocation5 + $0x38] sm:$0xff] %v190_v7 }
  0x7f   :  { %207 = vst [vmem:[#allocation5 + $0x40] sm:$0xff] %v191_v8  ;;  %208 = vst [vmem:[#allocation5 + $0x48] sm:$0xff] %v192_v12 }
  0x80   :  { %209 = vst [vmem:[#allocation5 + $0x50] sm:$0xff] %v193_v13  ;;  %210 = vst [vmem:[#allocation5 + $0x58] sm:$0xff] %v194_v14 }
  0x81   :  { %211 = vst [vmem:[#allocation5 + $0x60] sm:$0xff] %v195_v18  ;;  %212 = vst [vmem:[#allocation5 + $0x68] sm:$0xff] %v196_v19 }
  0x82   :  { %213 = vst [vmem:[#allocation5 + $0x70] sm:$0xff] %v197_v20  ;;  %214 = vst [vmem:[#allocation5 + $0x78] sm:$0xff] %v198_v24 }
  0x83   :  { %358 = shalt.err (!%p355_p10)
}
  0x84   :  { %226 = dma.vmem_to_hbm [thread:$0]  %s221_s14, 2048, %s559_s1, [#allocation4], %s396_s9, %s396_s9, %s397_s10  }
  0x85   :  { %381 = dma.done.wait [#allocation4], 2048  }
  0x86   :  { %382 = vsyncadd [#allocation4], 4294965248 }
  0x87   :  { %230 = vsyncpa [#allocation3], 1 }
  0x88   :  { %231 = vsyncpa [#allocation4], 1 }

</bundles_post_ra>
